<compile_context>
chip_gen: v7x
topology: tpu7x:2x2x1
jax: 0.10.0
libtpu: 0.0.40
codegen_flags: <defaults>
</compile_context>

<pallas_src>
import functools

import jax
import jax.numpy as jnp
from jax.experimental import pallas as pl
from jax.experimental.pallas import tpu as pltpu


# --------------------------------------------------------------------------
# Helpers
# --------------------------------------------------------------------------
def _ceil_to(x, m):
    return ((x + m - 1) // m) * m


def _block_bytes(shape, elem_bytes):
    """Padded VMEM footprint of ONE buffer of `shape`: last dim pads to 128
    lanes, second-to-last pads to the dtype's sublane pack (8 for 32-bit,
    16 for 16-bit)."""
    s = list(shape)
    s[-1] = _ceil_to(s[-1], 128)
    if len(s) >= 2:
        sublane = max(8, 32 // max(1, elem_bytes))
        s[-2] = _ceil_to(s[-2], sublane)
    n = 1
    for d in s:
        n *= d
    return n * elem_bytes


def _vmem_budget_bytes():
    """~45% of physical VMEM (64 MiB on v7x, 128 MiB on v5e/v6e)."""
    cap = None
    try:
        cap = getattr(pltpu.get_tpu_info(), "vmem_capacity_bytes", None)
    except Exception:
        cap = None
    if not cap:
        cap = 64 << 20          # conservative (v7x-sized) fallback
    return max(16 << 20, int(cap * 0.45))


def _vmem_limit(working_set_bytes):
    # explicit limit covering the padded working set + headroom for internal
    # scratch; never below the 32 MiB default, never above 128 MiB.
    return int(min(max(working_set_bytes + (8 << 20), 32 << 20), 128 << 20))


def _accum_chunks(x_ref, acc_ref, *, n_chunks, lane_chunk):
    """acc_ref[...] += 128-lane chunks of x_ref (per-chunk ref loads keep vreg
    pressure bounded and let vld slots overlap the VPU adds)."""
    for k in range(n_chunks):                         # static unroll
        start = k * lane_chunk
        acc_ref[...] += x_ref[:, :, pl.ds(start, lane_chunk)].astype(jnp.float32)


# --------------------------------------------------------------------------
# Fused single-pass kernel: mean -> FC -> sigmoid -> scale on a resident block
# --------------------------------------------------------------------------
def _fused_se_kernel(x_ref, w1_ref, w2_ref, o_ref, acc_ref, *, hw, lane_chunk):
    # x_ref / o_ref: (b_tile, C, HW);  w1: (C, hid);  w2: (hid, C)
    # acc_ref: (b_tile, C, lane_chunk) f32 scratch
    n_full = hw // lane_chunk
    rem = hw - n_full * lane_chunk

    acc_ref[...] = jnp.zeros_like(acc_ref)
    _accum_chunks(x_ref, acc_ref, n_chunks=n_full, lane_chunk=lane_chunk)
    sums = jnp.sum(acc_ref[...], axis=-1)             # one cross-lane reduce
    if rem:
        sums = sums + jnp.sum(
            x_ref[:, :, pl.ds(n_full * lane_chunk, rem)].astype(jnp.float32),
            axis=-1)
    mean = sums * (1.0 / hw)                           # (b_tile, C) f32

    # excitation: both tiny matmuls batched across the whole B tile (M = b_tile)
    hmid = jnp.maximum(
        jnp.dot(mean, w1_ref[...].astype(jnp.float32),
                preferred_element_type=jnp.float32), 0.0)
    gate = jax.nn.sigmoid(
        jnp.dot(hmid, w2_ref[...].astype(jnp.float32),
                preferred_element_type=jnp.float32))   # (b_tile, C)

    o_ref[...] = (x_ref[...] * gate[:, :, None]).astype(o_ref.dtype)


# --------------------------------------------------------------------------
# Two-pass path, pass 1: per-(b, c) spatial sums (mask-free chunked adds)
# --------------------------------------------------------------------------
def _squeeze_sum_kernel(x_ref, sums_ref, acc_ref, *, hw_total, lane_chunk):
    # x_ref: (b_tile, C, hw_tile); sums_ref: (b_tile, C) f32 (resident over h)
    # acc_ref: (b_tile, C, lane_chunk) f32
    h = pl.program_id(1)
    hw_tile = x_ref.shape[-1]
    n_hw = (hw_total + hw_tile - 1) // hw_tile         # static
    last_valid = hw_total - (n_hw - 1) * hw_tile       # static, <= hw_tile

    @pl.when(h == 0)
    def _():
        acc_ref[...] = jnp.zeros_like(acc_ref)

    if n_hw > 1:
        # steady state: pure unmasked add stream (hw_tile is a 128-multiple)
        @pl.when(h < n_hw - 1)
        def _():
            _accum_chunks(x_ref, acc_ref, n_chunks=hw_tile // lane_chunk,
                          lane_chunk=lane_chunk)

    @pl.when(h == n_hw - 1)
    def _():
        # last (possibly ragged) tile: accumulate only the valid prefix via
        # exact static slices (no iota/compare/select), then do the single
        # cross-lane reduce and emit lane-dense (b_tile, C) sums.
        n_full = last_valid // lane_chunk
        rem = last_valid - n_full * lane_chunk
        _accum_chunks(x_ref, acc_ref, n_chunks=n_full, lane_chunk=lane_chunk)
        total = jnp.sum(acc_ref[...], axis=-1)
        if rem:
            total = total + jnp.sum(
                x_ref[:, :, pl.ds(n_full * lane_chunk, rem)].astype(jnp.float32),
                axis=-1)
        sums_ref[...] = total


# --------------------------------------------------------------------------
# Two-pass path, pass 2: elementwise scale with a lane-dense (b_tile, C) gate
# --------------------------------------------------------------------------
def _scale_kernel(gate_ref, x_ref, o_ref):
    g = gate_ref[...]                                  # (b_tile, C) f32
    o_ref[...] = (x_ref[...] * g[:, :, None]).astype(o_ref.dtype)


# --------------------------------------------------------------------------
# Tile selection (padding-aware)
# --------------------------------------------------------------------------
def _two_pass_working_set(b_tile, hw_tile, C, elem_bytes):
    xblk = _block_bytes((b_tile, C, hw_tile), elem_bytes)
    gblk = _block_bytes((b_tile, C), 4)
    accblk = _block_bytes((b_tile, C, min(128, hw_tile)), 4)
    ws1 = 2 * xblk + 2 * gblk + accblk                 # squeeze pass
    ws2 = 4 * xblk + 2 * gblk                          # scale pass
    return ws1, ws2


def _choose_two_pass_tiles(B, C, HW, elem_bytes, budget):
    def fits(bt, ht):
        ws1, ws2 = _two_pass_working_set(bt, ht, C, elem_bytes)
        return max(ws1, ws2) <= budget

    def best_hw_tile(bt):
        if fits(bt, HW):
            return HW                                  # full extent, no raggedness
        n = 2
        while True:                                    # balanced 128-multiple tiles
            ht = _ceil_to(-(-HW // n), 128)
            if fits(bt, ht) or ht == 128:
                return ht
            n += 1

    b_tile = B
    while True:
        ht = best_hw_tile(b_tile)
        if fits(b_tile, ht):
            return b_tile, ht
        # gate blocks are (b_tile, C): b_tile must stay == B or a multiple of 8
        if B < 8 or b_tile <= 8:
            return b_tile, ht                          # accept; vmem_limit covers it
        b_tile = max(8, ((b_tile // 2) // 8) * 8)


# --------------------------------------------------------------------------
# Wrapper
# --------------------------------------------------------------------------
def se_layer(x, w1, w2, *, alias_input=False, force_two_pass=False,
             vmem_budget_bytes=None):
    """out = x * sigmoid(relu(mean_hw(x) @ W1) @ W2)[:, :, None, None].

    x: (B, C, H, W) f32/bf16; w1: (C, C//r); w2: (C//r, C)  (transposed
    nn.Linear.weight so the kernel computes a plain y @ W).  Reductions, FC
    matmuls and the gate are kept in f32.  Set alias_input=True only if the
    caller no longer needs x (donates its buffer).  force_two_pass /
    vmem_budget_bytes are test/debug knobs.
    """
    B, C, H, W = x.shape
    HW = H * W
    hid = w1.shape[1]
    eb = jnp.dtype(x.dtype).itemsize
    x_flat = x.reshape(B, C, HW)                       # free (row-major) reshape
    budget = int(vmem_budget_bytes) if vmem_budget_bytes else _vmem_budget_bytes()

    # ---------------- fused single-pass path (1R + 1W of HBM) ----------------
    def _fused_ws(bt):
        xblk = _block_bytes((bt, C, HW), eb)
        wblk = 2 * (_block_bytes((C, hid), jnp.dtype(w1.dtype).itemsize) +
                    _block_bytes((hid, C), jnp.dtype(w2.dtype).itemsize))
        acc = _block_bytes((bt, C, min(128, HW)), 4)
        return 4 * xblk + wblk + acc                   # 2x in + 2x out + weights

    fused_bt = None
    if not force_two_pass:
        bt = B
        while True:
            if _fused_ws(bt) <= budget:
                fused_bt = bt
                break
            if bt == 1:
                break
            bt = max(1, bt // 2)

    if fused_bt is not None:
        lane_chunk = min(128, HW)
        n_b = pl.cdiv(B, fused_bt)
        ws = _fused_ws(fused_bt)
        out_flat = pl.pallas_call(
            functools.partial(_fused_se_kernel, hw=HW, lane_chunk=lane_chunk),
            out_shape=jax.ShapeDtypeStruct((B, C, HW), x.dtype),
            grid=(n_b,),
            in_specs=[
                pl.BlockSpec((fused_bt, C, HW), lambda b: (b, 0, 0)),
                pl.BlockSpec((C, hid), lambda b: (0, 0)),
                pl.BlockSpec((hid, C), lambda b: (0, 0)),
            ],
            out_specs=pl.BlockSpec((fused_bt, C, HW), lambda b: (b, 0, 0)),
            scratch_shapes=[pltpu.VMEM((fused_bt, C, lane_chunk), jnp.float32)],
            compiler_params=pltpu.CompilerParams(
                dimension_semantics=("parallel",),
                vmem_limit_bytes=_vmem_limit(ws)),
            cost_estimate=pl.CostEstimate(
                flops=int(2 * B * C * HW + 4 * B * C * hid),
                transcendentals=int(B * C),
                bytes_accessed=int(2 * B * C * HW * eb + 2 * C * hid * 4)),
            input_output_aliases=({0: 0} if alias_input else {}),
        )(x_flat, w1, w2)
        return out_flat.reshape(B, C, H, W)

    # ---------------- two-pass path (planes too large for the fused path) ----
    b_tile, hw_tile = _choose_two_pass_tiles(B, C, HW, eb, budget)
    lane_chunk = min(128, hw_tile)
    n_b = pl.cdiv(B, b_tile)
    n_hw = pl.cdiv(HW, hw_tile)
    ws1, ws2 = _two_pass_working_set(b_tile, hw_tile, C, eb)

    # pass 1: per-(b, c) spatial sums
    sums = pl.pallas_call(
        functools.partial(_squeeze_sum_kernel, hw_total=HW, lane_chunk=lane_chunk),
        out_shape=jax.ShapeDtypeStruct((B, C), jnp.float32),
        grid=(n_b, n_hw),
        in_specs=[pl.BlockSpec((b_tile, C, hw_tile), lambda b, h: (b, 0, h))],
        out_specs=pl.BlockSpec((b_tile, C), lambda b, h: (b, 0)),
        scratch_shapes=[pltpu.VMEM((b_tile, C, lane_chunk), jnp.float32)],
        compiler_params=pltpu.CompilerParams(
            dimension_semantics=("parallel", "arbitrary"),
            vmem_limit_bytes=_vmem_limit(ws1)),
        cost_estimate=pl.CostEstimate(
            flops=int(B * C * HW), transcendentals=0,
            bytes_accessed=int(B * C * HW * eb + B * C * 4)),
    )(x_flat)

    # excitation: two tiny FC matmuls + sigmoid (O(B*C*hid) flops) in plain XLA
    # so the bandwidth-bound Pallas passes don't carry the full-C coupling.
    mean = sums * (1.0 / HW)
    gate = jax.nn.sigmoid(
        jnp.maximum(mean @ w1.astype(jnp.float32), 0.0) @ w2.astype(jnp.float32))
    gate = gate.astype(jnp.float32)                    # (B, C) lane-dense

    # pass 2: out = x * gate, lane-dense streaming, both axes parallel
    out_flat = pl.pallas_call(
        _scale_kernel,
        out_shape=jax.ShapeDtypeStruct((B, C, HW), x.dtype),
        grid=(n_b, n_hw),
        in_specs=[
            pl.BlockSpec((b_tile, C), lambda b, h: (b, 0)),
            pl.BlockSpec((b_tile, C, hw_tile), lambda b, h: (b, 0, h)),
        ],
        out_specs=pl.BlockSpec((b_tile, C, hw_tile), lambda b, h: (b, 0, h)),
        compiler_params=pltpu.CompilerParams(
            dimension_semantics=("parallel", "parallel"),
            vmem_limit_bytes=_vmem_limit(ws2)),
        cost_estimate=pl.CostEstimate(
            flops=int(B * C * HW), transcendentals=0,
            bytes_accessed=int(2 * B * C * HW * eb + B * C * 4)),
        input_output_aliases=({1: 0} if alias_input else {}),
    )(gate, x_flat)

    return out_flat.reshape(B, C, H, W)


def se_layer_ref(x, w1, w2):
    """Pure-JAX reference matching the PyTorch forward."""
    y = jnp.mean(x.astype(jnp.float32), axis=(2, 3))   # (B, C)
    h = jnp.maximum(y @ w1.astype(jnp.float32), 0.0)   # (B, C//r)
    s = jax.nn.sigmoid(h @ w2.astype(jnp.float32))     # (B, C)
    return (x * s[:, :, None, None]).astype(x.dtype)


if __name__ == "__main__":
    B, C, H, W = 2, 16, 16, 16
    reduction = 8
    hid = C // reduction

    key = jax.random.PRNGKey(0)
    kx, k1, k2 = jax.random.split(key, 3)

    x = jax.random.normal(kx, (B, C, H, W), dtype=jnp.float32)
    # nn.Linear(channel, channel//reduction, bias=False).weight is (C//r, C);
    # we store it transposed so the kernel computes y @ W1.
    w1 = jax.random.normal(k1, (C, hid), dtype=jnp.float32) * (1.0 / jnp.sqrt(C))
    w2 = jax.random.normal(k2, (hid, C), dtype=jnp.float32) * (1.0 / jnp.sqrt(hid))

    ref = se_layer_ref(x, w1, w2)

    # 1) default: fused single-pass path (plane fits VMEM)
    out_fused = jax.block_until_ready(se_layer(x, w1, w2))
    assert out_fused.shape == (B, C, H, W)
    assert jnp.allclose(out_fused, ref, atol=1e-5, rtol=1e-5)

    # 2) forced two-pass path with a tiny budget (forces hw_tile=128, n_hw=2)
    out_2p = jax.block_until_ready(
        se_layer(x, w1, w2, force_two_pass=True, vmem_budget_bytes=128 * 1024))
    assert jnp.allclose(out_2p, ref, atol=1e-5, rtol=1e-5)

    # 3) ragged spatial extent (HW=195) exercising the remainder handling
    x2 = jax.random.normal(kx, (B, C, 13, 15), dtype=jnp.float32)
    ref2 = se_layer_ref(x2, w1, w2)
    out2 = jax.block_until_ready(
        se_layer(x2, w1, w2, force_two_pass=True, vmem_budget_bytes=128 * 1024))
    assert jnp.allclose(out2, ref2, atol=1e-5, rtol=1e-5)

    print("KERNEL_OK")
</pallas_src>

<mosaic_0001>
module attributes {stable_mosaic.version = 11 : i64} {
  func.func @_fused_se_kernel(%arg0: i32, %arg1: memref<2x16x256xf32, #tpu.memory_space<vmem>>, %arg2: memref<16x2xf32, #tpu.memory_space<vmem>>, %arg3: memref<2x16xf32, #tpu.memory_space<vmem>>, %arg4: memref<2x16x256xf32, #tpu.memory_space<vmem>>, %arg5: memref<2x16x128xf32, #tpu.memory_space<vmem>>) attributes {dimension_semantics = [#tpu.dimension_semantics<parallel>], iteration_bounds = array<i64: 1>, scalar_prefetch = 0 : i64, scratch_operands = 1 : i64, tpu.core_type = #tpu.core_type<tc>, window_params = [{transform_indices = @transform_0, window_bounds = array<i64: 2, 16, 256>}, {pipeline_mode = #tpu.pipeline_mode<synchronous>, transform_indices = @transform_1, window_bounds = array<i64: 16, 2>}, {pipeline_mode = #tpu.pipeline_mode<synchronous>, transform_indices = @transform_2, window_bounds = array<i64: 2, 16>}, {transform_indices = @transform_3, window_bounds = array<i64: 2, 16, 256>}]} {
    %cst = arith.constant 0.000000e+00 : f32
    %0 = vector.broadcast %cst : f32 to vector<2x16x128xf32>
    %c0 = arith.constant 0 : index
    %c0_0 = arith.constant 0 : index
    %c0_1 = arith.constant 0 : index
    %1 = vector.load %arg5[%c0, %c0_0, %c0_1] : memref<2x16x128xf32, #tpu.memory_space<vmem>>, vector<2x16x128xf32>
    tpu.vector_store %arg5[%c0, %c0_0, %c0_1], %0 {strides = array<i32>} : memref<2x16x128xf32, #tpu.memory_space<vmem>>, vector<2x16x128xf32>,
    %c0_2 = arith.constant 0 : index
    %c0_3 = arith.constant 0 : index
    %c0_4 = arith.constant 0 : index
    %2 = vector.load %arg5[%c0_2, %c0_3, %c0_4] : memref<2x16x128xf32, #tpu.memory_space<vmem>>, vector<2x16x128xf32>
    %c0_5 = arith.constant 0 : index
    %c0_6 = arith.constant 0 : index
    %c0_7 = arith.constant 0 : index
    %3 = vector.load %arg1[%c0_5, %c0_6, %c0_7] : memref<2x16x256xf32, #tpu.memory_space<vmem>>, vector<2x16x128xf32>
    %4 = arith.addf %2, %3 : vector<2x16x128xf32>
    %c0_8 = arith.constant 0 : index
    %c0_9 = arith.constant 0 : index
    %c0_10 = arith.constant 0 : index
    %5 = vector.load %arg5[%c0_8, %c0_9, %c0_10] : memref<2x16x128xf32, #tpu.memory_space<vmem>>, vector<2x16x128xf32>
    tpu.vector_store %arg5[%c0_8, %c0_9, %c0_10], %4 {strides = array<i32>} : memref<2x16x128xf32, #tpu.memory_space<vmem>>, vector<2x16x128xf32>,
    %c0_11 = arith.constant 0 : index
    %c0_12 = arith.constant 0 : index
    %c0_13 = arith.constant 0 : index
    %6 = vector.load %arg5[%c0_11, %c0_12, %c0_13] : memref<2x16x128xf32, #tpu.memory_space<vmem>>, vector<2x16x128xf32>
    %c0_14 = arith.constant 0 : index
    %c0_15 = arith.constant 0 : index
    %c128 = arith.constant 128 : index
    %7 = vector.load %arg1[%c0_14, %c0_15, %c128] : memref<2x16x256xf32, #tpu.memory_space<vmem>>, vector<2x16x128xf32>
    %8 = arith.addf %6, %7 : vector<2x16x128xf32>
    %c0_16 = arith.constant 0 : index
    %c0_17 = arith.constant 0 : index
    %c0_18 = arith.constant 0 : index
    %9 = vector.load %arg5[%c0_16, %c0_17, %c0_18] : memref<2x16x128xf32, #tpu.memory_space<vmem>>, vector<2x16x128xf32>
    tpu.vector_store %arg5[%c0_16, %c0_17, %c0_18], %8 {strides = array<i32>} : memref<2x16x128xf32, #tpu.memory_space<vmem>>, vector<2x16x128xf32>,
    %c0_19 = arith.constant 0 : index
    %c0_20 = arith.constant 0 : index
    %c0_21 = arith.constant 0 : index
    %10 = vector.load %arg5[%c0_19, %c0_20, %c0_21] : memref<2x16x128xf32, #tpu.memory_space<vmem>>, vector<2x16x128xf32>
    %cst_22 = arith.constant dense<0.000000e+00> : vector<2x16xf32>
    %11 = vector.multi_reduction <add>, %10, %cst_22 [2] : vector<2x16x128xf32> to vector<2x16xf32>
    %cst_23 = arith.constant 3.906250e-03 : f32
    %12 = vector.broadcast %cst_23 : f32 to vector<2x16xf32>
    %13 = arith.mulf %11, %12 : vector<2x16xf32>
    %c0_24 = arith.constant 0 : index
    %c0_25 = arith.constant 0 : index
    %14 = vector.load %arg2[%c0_24, %c0_25] : memref<16x2xf32, #tpu.memory_space<vmem>>, vector<16x2xf32>
    %cst_26 = arith.constant dense<0.000000e+00> : vector<2x2xf32>
    %15 = tpu.matmul %13, %14, %cst_26 {dimension_numbers = #tpu.dot_dimension_numbers<[1], [0], [0], [1], [0, 0, 1, 1], [], []>} : vector<2x16xf32>, vector<16x2xf32>, vector<2x2xf32> -> vector<2x2xf32>
    %cst_27 = arith.constant 0.000000e+00 : f32
    %16 = vector.broadcast %cst_27 : f32 to vector<2x2xf32>
    %17 = arith.maximumf %15, %16 : vector<2x2xf32>
    %c0_28 = arith.constant 0 : index
    %c0_29 = arith.constant 0 : index
    %18 = vector.load %arg3[%c0_28, %c0_29] : memref<2x16xf32, #tpu.memory_space<vmem>>, vector<2x16xf32>
    %cst_30 = arith.constant dense<0.000000e+00> : vector<2x16xf32>
    %19 = tpu.matmul %17, %18, %cst_30 {dimension_numbers = #tpu.dot_dimension_numbers<[1], [0], [0], [1], [0, 0, 1, 1], [], []>} : vector<2x2xf32>, vector<2x16xf32>, vector<2x16xf32> -> vector<2x16xf32>
    %20 = arith.negf %19 : vector<2x16xf32>
    %21 = math.exp %20 : vector<2x16xf32>
    %cst_31 = arith.constant 1.000000e+00 : f32
    %22 = vector.broadcast %cst_31 : f32 to vector<2x16xf32>
    %23 = arith.addf %22, %21 : vector<2x16xf32>
    %24 = arith.divf %22, %23 : vector<2x16xf32>
    %c0_32 = arith.constant 0 : index
    %c0_33 = arith.constant 0 : index
    %c0_34 = arith.constant 0 : index
    %25 = vector.load %arg1[%c0_32, %c0_33, %c0_34] : memref<2x16x256xf32, #tpu.memory_space<vmem>>, vector<2x16x256xf32>
    %26 = vector.shape_cast %24 : vector<2x16xf32> to vector<2x16x1xf32>
    %27 = vector.broadcast %26 : vector<2x16x1xf32> to vector<2x16x256xf32>
    %28 = arith.mulf %25, %27 : vector<2x16x256xf32>
    %c0_35 = arith.constant 0 : index
    %c0_36 = arith.constant 0 : index
    %c0_37 = arith.constant 0 : index
    %29 = vector.load %arg4[%c0_35, %c0_36, %c0_37] : memref<2x16x256xf32, #tpu.memory_space<vmem>>, vector<2x16x256xf32>
    tpu.vector_store %arg4[%c0_35, %c0_36, %c0_37], %28 {strides = array<i32>} : memref<2x16x256xf32, #tpu.memory_space<vmem>>, vector<2x16x256xf32>,
    return
  }
  func.func @transform_0(%arg0: i32) -> (i32, i32, i32) {
    %c0_i32 = arith.constant 0 : i32
    %c0_i32_0 = arith.constant 0 : i32
    %c0_i32_1 = arith.constant 0 : i32
    return %arg0, %c0_i32, %c0_i32_0 : i32, i32, i32
  }
  func.func @transform_1(%arg0: i32) -> (i32, i32) {
    %c0_i32 = arith.constant 0 : i32
    %c0_i32_0 = arith.constant 0 : i32
    %c0_i32_1 = arith.constant 0 : i32
    return %c0_i32, %c0_i32_0 : i32, i32
  }
  func.func @transform_2(%arg0: i32) -> (i32, i32) {
    %c0_i32 = arith.constant 0 : i32
    %c0_i32_0 = arith.constant 0 : i32
    %c0_i32_1 = arith.constant 0 : i32
    return %c0_i32, %c0_i32_0 : i32, i32
  }
  func.func @transform_3(%arg0: i32) -> (i32, i32, i32) {
    %c0_i32 = arith.constant 0 : i32
    %c0_i32_0 = arith.constant 0 : i32
    %c0_i32_1 = arith.constant 0 : i32
    return %arg0, %c0_i32, %c0_i32_0 : i32, i32, i32
  }
}

</mosaic_0001>

<bundles_post_ra>
// kernel: tpu_custom_call.1
= control target key start
LH: loop header
LB: loop body
LE: loop exit
PB: predicated region body
PF: predicated region fallthrough
CT: control target
= control target key end

     0   :  { %8 = vsyncpa [#allocation4], 0  ;;  %s514_s0 = inlined_call_operand.hbm [shape: f32[2,16,256], index: 0, kind: input, shape index: {}]   ;;  %s515_s1 = inlined_call_operand.vmem [shape: f32[16,2], index: 1, kind: input, shape index: {}]   ;;  %s516_s2 = inlined_call_operand.vmem [shape: f32[2,16], index: 2, kind: input, shape index: {}]   ;;  %s517_s3 = inlined_call_operand.hbm [shape: f32[2,16,256], index: 3, kind: output, shape index: {}]  }
   0x1   :  { %9 = vsyncpa [#allocation5], 0  ;;  %s416_s12 = smov [#allocation3]   ;;  %s368_s16 = scalar_lea.hbm %s514_s0, 1024 }
   0x2   :  { %s15_s13 = sshll.u32 %s416_s12, 4  ;;  %p369_p0 = scmp.ne.s32.totalorder %s514_s0, %s368_s16  ;;  %s16_s13 = int_to_ptr.vmem [resolvable:$true] %s15_s13 }
   0x3   :  { %p372_p1 = scmp.lt.u32.totalorder %s368_s16, %s514_s0 }
   0x5   :  { %p374_p2 = pnand %p372_p1, %p369_p0 }
   0x7   :  { %377 = shalt.err (!%p374_p2)
}
   0x8   :  { %s378_s21 = scalar_lea.vmem %s16_s13, 1024  ;;  %p383_p4 = scmp.lt.s32.totalorder %s16_s13, %s16_s13 }
   0x9   :  { %p379_p3 = scmp.ne.s32.totalorder %s16_s13, %s378_s21  ;;  %p384_p5 = scmp.lt.s32.totalorder %s378_s21, %s378_s21 }
   0xb   :  { %p385_p6 = por %p384_p5, %p383_p4 }
   0xd   :  { %p386_p7 = pnand %p385_p6, %p379_p3 }
   0xf   :  { %389 = shalt.err (!%p386_p7)
}
  0x10   :  { %s417_s22 = smov 256   ;;  %s418_s23 = smov 16  }
  0x11   :  { %21 = dma.hbm_to_vmem [thread:$0]  %s514_s0, 1024, %s16_s13, [#allocation4], %s417_s22, %s417_s22, %s418_s23  }
  0x12   :  { %412 = dma.done.wait [#allocation4], 1024  }
  0x13   :  { %413 = vsyncadd [#allocation4], 4294966272  ;;  %v458_v0 = vld [vmem:[#allocation3 + $0x20] sm:$0xff]  ;;  %v460_v1 = vld [vmem:[#allocation3 + $0x28] sm:$0xff]  ;;  %v419_v15 = vmov 0.0|0.0   ;;  %vm420_vm0 = vmmov 0   ;;  %v87_v17 = vlaneseq }
  0x14   :  { %v462_v2 = vld [vmem:[#allocation3] sm:$0xff]  ;;  %v59_v3 = vadd.f32 %v460_v1, %v458_v0  ;;  %v466_v4 = vld [vmem:[#allocation3 + $0x8] sm:$0xff]  ;;  %v468_v5 = vld [vmem:[#allocation3 + $0x30] sm:$0xff]  ;;  %354 = vmatprep.subr.bf16.mxu0 %v419_v15  ;;  %v421_v16 = vmov 0.0   ;;  %vm98_vm1 = vcmask 130112   ;;  %vm109_vm2 = vcmask 1041409  }
  0x15   :  { %v470_v6 = vld [vmem:[#allocation3 + $0x38] sm:$0xff]  ;;  %v57_v7 = vadd.f32 %v466_v4, %v462_v2  ;;  %v474_v8 = vld [vmem:[#allocation3 + $0x10] sm:$0xff]  ;;  %v81_v12 = vld [vmem:[%s515_s1] sm:$0xff]  ;;  %346 = vmatprep.mubr.msk.f32.mxu0 %vm420_vm0, %v421_v16  ;;  %349 = vmatprep.subr.mxu1 %v421_v16  ;;  %v88_v18 = vand.u32 127, %v87_v17  ;;  %v90_v19 = vshrl.u32 %v87_v17, 7  ;;  %vm111_vm3 = vcmask 130048  }
  0x16   :  { %v476_v9 = vld [vmem:[#allocation3 + $0x18] sm:$0xff]  ;;  %73 = vadd.xlane.f32.xlu1 %v59_v3  ;;  %v60_v10 = vadd.f32 %v470_v6, %v468_v5  ;;  %v82_v13 = vld [vmem:[%s515_s1 + $0x8] sm:$0xff]  ;;  %351 = vmatprep.mubr.msk.f32.mxu1 %vm420_vm0, %v421_v16  ;;  %v185_v38 = vld [vmem:[%s516_s2] sm:$0x3]  ;;  %vm190_vm4 = vcmask 1041408   ;;  %vm186_vm5 = vcmask 15360  }
  0x17   :  { %69 = vadd.xlane.f32.xlu0 %v57_v7  ;;  %v58_v11 = vadd.f32 %v476_v9, %v474_v8  ;;  %v355_v14 = vpack.c.bf16 %v82_v13, %v81_v12  ;;  %v93_v20 = vadd.s32 4294967288, %v88_v18  ;;  %v91_v23 = vsub.s32 %v88_v18, %v90_v19  ;;  %350 = vmatpush3.msk.msra.mxu1 %vm190_vm4, %v185_v38  ;;  %s422_s2 = smov [#allocation6]  }
  0x18   :  { %v280_v47 = vsub.s32 0, %v90_v19  ;;  %v291_v50 = vsub.s32 1, %v90_v19  ;;  %s321_s30 = sshll.u32 %s422_s2, 4  ;;  %s322_s30 = int_to_ptr.vmem [resolvable:$true] %s321_s30 }
  0x19   :  { %356 = vmatpush3.bf16.msra.mxu0 %v355_v14  ;;  %v96_v25 = vsub.s32 %v93_v20, %v90_v19  ;;  %s390_s4 = scalar_lea.vmem %s322_s30, 1024  ;;  %p395_p9 = scmp.lt.s32.totalorder %s322_s30, %s322_s30 }
  0x1a   :  { %75 = vadd.xlane.f32.xlu1 %v60_v10  ;;  %p391_p8 = scmp.ne.s32.totalorder %s322_s30, %s390_s4  ;;  %p396_p10 = scmp.lt.s32.totalorder %s390_s4, %s390_s4 }
  0x1b   :  { %71 = vadd.xlane.f32.xlu0 %v58_v11 }
  0x1c   :  { %p397_p11 = por %p396_p10, %p395_p9 }
  0x1e   :  { %p398_p12 = pnand %p397_p11, %p391_p8 }
  0xa3   :  { %v74_v21 = vpop.xlane.xlu1 %73 }
  0xa4   :  { %v70_v22 = vpop.xlane.xlu0 %69  ;;  %v79_v24 = vmul.f32 0.00390625, %v74_v21 }
  0xa5   :  { %v77_v26 = vmul.f32 0.00390625, %v70_v22 }
  0xa6   :  { %v103_v31 = vrot.slane %v79_v24, %v91_v23 }
  0xa7   :  { %v76_v27 = vpop.xlane.xlu1 %75  ;;  %v92_v33 = vrot.slane %v77_v26, %v91_v23 }
  0xa8   :  { %v80_v28 = vmul.f32 0.00390625, %v76_v27  ;;  %v72_v29 = vpop.xlane.xlu0 %71 }
  0xa9   :  { %v78_v30 = vmul.f32 0.00390625, %v72_v29 }
  0xaa   :  { %v107_v32 = vrot.slane %v80_v28, %v96_v25 }
  0xab   :  { %v97_v34 = vrot.slane %v78_v30, %v96_v25 }
  0xac   :  { %v108_v35 = vsel %vm98_vm1, %v107_v32, %v103_v31 }
  0xad   :  { %v99_v36 = vsel %vm98_vm1, %v97_v34, %v92_v33 }
  0xae   :  { %v110_v37 = vsel %vm109_vm2, %v108_v35, %v99_v36 }
  0xaf   :  { %347 = vmatmul.mubr.msk.f32.vlgmr.msra.gmra.mrb[0].mxu0 %vm111_vm3, %v110_v37 }
 0x182   :  { %v180_v39 = vpop.f32.mrb[0].mxu0 }
 0x183   :  { %v184_v40 = vmax.f32 %v180_v39, 0.0  ;;  %v348_v41 = vpop.f32.mrb[1].mxu0 }
 0x185   :  { %352 = vmatmul.mubr.msk.f32.vlgmr.msra.gmra.mrb[0].mxu1 %vm186_vm5, %v184_v40 }
 0x258   :  { %v260_v42 = vpop.f32.mrb[0].mxu1 }
 0x259   :  { %v336_v43 = vmul.f32 -1.442695, %v260_v42  ;;  %v353_v44 = vpop.f32.mrb[1].mxu1 }
 0x25b   :  { %364 = vpow2.f32 %v336_v43 }
 0x265   :  { %v365_v45 = vpop.eup %364 }
 0x266   :  { %v267_v46 = vadd.f32 1.0, %v365_v45 }
 0x268   :  { %366 = vrcp.f32 %v267_v46 }
 0x272   :  { %v367_v48 = vpop.eup %366 }
 0x273   :  { %v281_v49 = vrot.slane %v367_v48, %v280_v47  ;;  %v292_v51 = vrot.slane %v367_v48, %v291_v50 }
 0x275   :  { %287 = vbcast.lane.b32.xlu1 %v281_v49, 264  ;;  %283 = vbcast.lane.b32.xlu0 %v281_v49, 256 }
 0x279   :  { %294 = vbcast.lane.b32.xlu1 %v292_v51, 256 }
 0x27d   :  { %298 = vbcast.lane.b32.xlu1 %v292_v51, 264 }
 0x2e7   :  { %v288_v52 = vpop.permute.xlu1 %287  ;;  %v284_v53 = vpop.permute.xlu0 %283 }
 0x2e8   :  { %v302_v54 = vmul.f32 %v288_v52, %v474_v8  ;;  %v303_v55 = vmul.f32 %v288_v52, %v476_v9  ;;  %v300_v56 = vmul.f32 %v284_v53, %v462_v2  ;;  %v301_v57 = vmul.f32 %v284_v53, %v466_v4 }
 0x2ea   :  { %310 = vst [vmem:[#allocation6 + $0x10] sm:$0xff] %v302_v54  ;;  %311 = vst [vmem:[#allocation6 + $0x18] sm:$0xff] %v303_v55 }
 0x2eb   :  { %308 = vst [vmem:[#allocation6] sm:$0xff] %v300_v56  ;;  %309 = vst [vmem:[#allocation6 + $0x8] sm:$0xff] %v301_v57  ;;  %v295_v58 = vpop.permute.xlu1 %294 }
 0x2ec   :  { %v304_v59 = vmul.f32 %v295_v58, %v458_v0  ;;  %v305_v60 = vmul.f32 %v295_v58, %v460_v1 }
 0x2ee   :  { %312 = vst [vmem:[#allocation6 + $0x20] sm:$0xff] %v304_v59  ;;  %313 = vst [vmem:[#allocation6 + $0x28] sm:$0xff] %v305_v60 }
 0x2ef   :  { %v299_v61 = vpop.permute.xlu1 %298 }
 0x2f0   :  { %v306_v62 = vmul.f32 %v299_v61, %v468_v5  ;;  %v307_v63 = vmul.f32 %v299_v61, %v470_v6 }
 0x2f2   :  { %314 = vst [vmem:[#allocation6 + $0x30] sm:$0xff] %v306_v62  ;;  %315 = vst [vmem:[#allocation6 + $0x38] sm:$0xff] %v307_v63 }
 0x2f3   :  { %401 = shalt.err (!%p398_p12)
}
 0x2f4   :  { %s402_s7 = scalar_lea.hbm %s517_s3, 1024 }
 0x2f5   :  { %p403_p13 = scmp.ne.s32.totalorder %s517_s3, %s402_s7  ;;  %p406_p0 = scmp.lt.u32.totalorder %s402_s7, %s517_s3 }
 0x2f7   :  { %p408_p1 = pnand %p406_p0, %p403_p13 }
 0x2f9   :  { %411 = shalt.err (!%p408_p1)
}
 0x2fa   :  { %327 = dma.vmem_to_hbm [thread:$0]  %s322_s30, 1024, %s517_s3, [#allocation5], %s417_s22, %s417_s22, %s418_s23  }
 0x2fb   :  { %414 = dma.done.wait [#allocation5], 1024  }
 0x2fc   :  { %415 = vsyncadd [#allocation5], 4294966272 }
 0x2fd   :  { %331 = vsyncpa [#allocation4], 1 }
 0x2fe   :  { %332 = vsyncpa [#allocation5], 1 }

</bundles_post_ra>
